<compile_context>
chip_gen: v5e
topology: v5e:2x2
jax: 0.10.0
libtpu: 0.0.40
codegen_flags: <defaults>
</compile_context>

<pallas_src>
import jax
import jax.numpy as jnp
from jax.experimental import pallas as pl
from jax.experimental.pallas import tpu as pltpu

H1, H2, OUT = 64, 32, 1
LANE = 128
MAX_TB = 8192                      # absolute cap on the batch tile
VMEM_BUDGET = 36 * 1024 * 1024     # per-tile working-set budget (see _choose_tile)
VMEM_LIMIT = 48 * 1024 * 1024      # <= ~48 MiB so v7x's 64 MiB VMEM keeps headroom


def _round_up(n, m):
    return (n + m - 1) // m * m


def _choose_tile(B, D):
    """Pick (TB, num_tiles) so the 128-lane-padded working set fits VMEM_BUDGET."""
    Dp = _round_up(D, LANE)
    # Per-batch-row VMEM bytes (including lane padding):
    #   x block f32, double-buffered        : 2 * Dp * 4
    #   in-kernel bf16 copy of the x tile   :     Dp * 2
    #   h1 / h2 f32 (+ bf16 copies), 128-ln : 2 * 128 * (4 + 2)
    # TODO(synk): for extremely large input_size the feature axis would also
    # need tiling (K-axis grid); not needed for this module's typical sizes.
    per_row = 2 * Dp * 4 + Dp * 2 + 2 * LANE * 6
    tb_max = max(LANE, min(MAX_TB, (VMEM_BUDGET // per_row) // LANE * LANE))

    n_tiles = pl.cdiv(B, tb_max)
    if n_tiles == 1:
        if B >= 1024:
            # Split so both v7x TensorCores get work ("parallel" axis) and so
            # the x DMA of tile i+1 overlaps compute of tile i. Padding cost
            # is at most 127 rows per tile.
            n_tiles = 2
        else:
            # Tiny batch: single full-array block, pad only to a sublane multiple.
            return _round_up(B, 8), 1
    tb = _round_up(pl.cdiv(B, n_tiles), LANE)
    return tb, pl.cdiv(B, tb)


def mlp_kernel(x_ref, w1_ref, b1_ref, w2_ref, b2_ref, w3t_ref, b3_ref, o_ref):
    # Cast the streamed f32 x tile to bf16 in-kernel (VPU work hidden under the
    # block DMAs) so the MXU runs bf16 while HBM only carries x once, as f32.
    x_bf = x_ref[...].astype(jnp.bfloat16)

    # --- fc1 + ReLU (dropout1 is identity in eval mode) ---
    h1 = jnp.dot(x_bf, w1_ref[...], preferred_element_type=jnp.float32)
    h1 = jnp.maximum(h1 + b1_ref[...], 0.0)

    # --- fc2 + ReLU (dropout2 is identity in eval mode) ---
    h2 = jnp.dot(h1.astype(jnp.bfloat16), w2_ref[...],
                 preferred_element_type=jnp.float32)
    h2 = jnp.maximum(h2 + b2_ref[...], 0.0)

    # --- fc3 + sigmoid, folded into the lane-dense transpose ---
    # (1, H2) x (TB, H2) contracted on H2 -> (1, TB): the batch axis lands on
    # lanes, so the sigmoid and the output store are dense (no (TB, 1) masked
    # vst path, no 1-lane-wide MXU output).
    logits_t = jax.lax.dot_general(
        w3t_ref[...], h2.astype(jnp.bfloat16),
        dimension_numbers=(((1,), (1,)), ((), ())),
        preferred_element_type=jnp.float32)
    o_ref[...] = jax.nn.sigmoid(logits_t + b3_ref[...])

    # TODO(synk): training-mode dropout (p=0.2) would use pltpu.prng_seed +
    # pltpu.stateful_bernoulli; omitted since eval-mode forward() is identity.


@jax.jit
def simple_nn_forward(x, params):
    """x: (B, input_size) f32. params: dict w1,b1,w2,b2,w3,b3 (weights (in,out))."""
    B, D = x.shape
    TB, num_tiles = _choose_tile(B, D)
    B_pad = TB * num_tiles

    # x stays f32 and is streamed block-by-block; only the (small) tail is padded.
    if B_pad != B:
        x = jnp.pad(x, ((0, B_pad - B), (0, 0)))

    # Weights in bf16 (MXU inputs); biases stay f32 (act on the f32 accumulator,
    # keeps v5e's f32-only VPU/EUP path happy).
    w1 = params["w1"].astype(jnp.bfloat16)
    w2 = params["w2"].astype(jnp.bfloat16)
    w3t = params["w3"].astype(jnp.bfloat16).T          # (OUT, H2) = (1, 32)
    b1 = params["b1"].astype(jnp.float32)               # (1, H1)
    b2 = params["b2"].astype(jnp.float32)               # (1, H2)
    b3 = params["b3"].astype(jnp.float32)               # (1, OUT)

    const2 = lambda i: (0, 0)
    in_specs = [
        pl.BlockSpec((TB, D), lambda i: (i, 0)),        # x tile (streamed, f32)
        pl.BlockSpec((D, H1), const2),                  # w1 (VMEM-resident)
        pl.BlockSpec((1, H1), const2),                  # b1
        pl.BlockSpec((H1, H2), const2),                 # w2
        pl.BlockSpec((1, H2), const2),                  # b2
        pl.BlockSpec((OUT, H2), const2),                # w3^T (row)
        pl.BlockSpec((1, OUT), const2),                 # b3
    ]
    # Lane-dense output: one (1, TB) row per grid step into a (1, B_pad) slab.
    out_spec = pl.BlockSpec((1, TB), lambda i: (0, i))

    flops = 2 * B_pad * (D * H1 + H1 * H2 + H2 * OUT)
    bytes_accessed = (
        B_pad * D * 4                                   # x (f32, read once)
        + (D * H1 + H1 * H2 + H2 * OUT) * 2             # weights (bf16)
        + (H1 + H2 + OUT) * 4                           # biases (f32)
        + B_pad * OUT * 4                               # output (f32, lane-dense)
    )
    cost = pl.CostEstimate(flops=flops,
                           transcendentals=B_pad,       # one sigmoid / row
                           bytes_accessed=bytes_accessed)

    out = pl.pallas_call(
        mlp_kernel,
        out_shape=jax.ShapeDtypeStruct((1, B_pad), jnp.float32),
        grid=(num_tiles,),
        in_specs=in_specs,
        out_specs=out_spec,
        compiler_params=pltpu.CompilerParams(
            dimension_semantics=("parallel",),          # shard batch across TCs (v7x)
            vmem_limit_bytes=VMEM_LIMIT,
        ),
        cost_estimate=cost,
    )(x, w1, b1, w2, b2, w3t, b3)

    # (1, B_pad) row-major == B_pad contiguous values: cheap reshape, drop pad.
    return out.reshape(B_pad, 1)[:B]


def init_params(key, input_size):
    """Deterministic init mirroring PyTorch nn.Linear shapes.
    Weights stored as (in_features, out_features) so the kernel does x @ W + b."""
    ks = jax.random.split(key, 6)

    def linear(kw, kb, fan_in, fan_out):
        bound = 1.0 / jnp.sqrt(jnp.float32(fan_in))
        w = jax.random.uniform(kw, (fan_in, fan_out), jnp.float32, -bound, bound)
        b = jax.random.uniform(kb, (1, fan_out), jnp.float32, -bound, bound)
        return w, b

    w1, b1 = linear(ks[0], ks[1], input_size, H1)
    w2, b2 = linear(ks[2], ks[3], H1, H2)
    w3, b3 = linear(ks[4], ks[5], H2, OUT)
    return {"w1": w1, "b1": b1, "w2": w2, "b2": b2, "w3": w3, "b3": b3}


def reference_forward(x, params):
    """Pure-JAX f32 reference (eval-mode dropout = identity)."""
    h1 = jnp.maximum(x @ params["w1"] + params["b1"], 0.0)
    h2 = jnp.maximum(h1 @ params["w2"] + params["b2"], 0.0)
    return jax.nn.sigmoid(h2 @ params["w3"] + params["b3"])


if __name__ == "__main__":
    key = jax.random.PRNGKey(0)
    k_x, k_p = jax.random.split(key)

    batch = 8
    input_size = 16

    x = jax.random.normal(k_x, (batch, input_size), jnp.float32)
    params = init_params(k_p, input_size)

    out = simple_nn_forward(x, params)
    out = jax.block_until_ready(out)

    assert out.shape == (batch, 1)
    assert bool(jnp.all((out >= 0.0) & (out <= 1.0)))

    ref = reference_forward(x, params)
    assert bool(jnp.allclose(out, ref, atol=3e-2, rtol=3e-2)), "mismatch vs reference"

    print("KERNEL_OK")
</pallas_src>

<mosaic_0001>
module attributes {stable_mosaic.version = 11 : i64} {
  func.func @mlp_kernel(%arg0: i32, %arg1: memref<8x16xf32, #tpu.memory_space<vmem>>, %arg2: memref<16x64xbf16, #tpu.memory_space<vmem>>, %arg3: memref<1x64xf32, #tpu.memory_space<vmem>>, %arg4: memref<64x32xbf16, #tpu.memory_space<vmem>>, %arg5: memref<1x32xf32, #tpu.memory_space<vmem>>, %arg6: memref<1x32xbf16, #tpu.memory_space<vmem>>, %arg7: memref<1x1xf32, #tpu.memory_space<vmem>>, %arg8: memref<1x8xf32, #tpu.memory_space<vmem>>) attributes {dimension_semantics = [#tpu.dimension_semantics<parallel>], iteration_bounds = array<i64: 1>, scalar_prefetch = 0 : i64, scratch_operands = 0 : i64, tpu.core_type = #tpu.core_type<tc>, window_params = [{transform_indices = @transform_0, window_bounds = array<i64: 8, 16>}, {pipeline_mode = #tpu.pipeline_mode<synchronous>, transform_indices = @transform_1, window_bounds = array<i64: 16, 64>}, {pipeline_mode = #tpu.pipeline_mode<synchronous>, transform_indices = @transform_2, window_bounds = array<i64: 1, 64>}, {pipeline_mode = #tpu.pipeline_mode<synchronous>, transform_indices = @transform_3, window_bounds = array<i64: 64, 32>}, {pipeline_mode = #tpu.pipeline_mode<synchronous>, transform_indices = @transform_4, window_bounds = array<i64: 1, 32>}, {pipeline_mode = #tpu.pipeline_mode<synchronous>, transform_indices = @transform_5, window_bounds = array<i64: 1, 32>}, {pipeline_mode = #tpu.pipeline_mode<synchronous>, transform_indices = @transform_6, window_bounds = array<i64: 1, 1>}, {transform_indices = @transform_7, window_bounds = array<i64: 1, 8>}]} {
    %c0 = arith.constant 0 : index
    %c0_0 = arith.constant 0 : index
    %0 = vector.load %arg1[%c0, %c0_0] : memref<8x16xf32, #tpu.memory_space<vmem>>, vector<8x16xf32>
    %1 = arith.truncf %0 : vector<8x16xf32> to vector<8x16xbf16>
    %c0_1 = arith.constant 0 : index
    %c0_2 = arith.constant 0 : index
    %2 = vector.load %arg2[%c0_1, %c0_2] : memref<16x64xbf16, #tpu.memory_space<vmem>>, vector<16x64xbf16>
    %cst = arith.constant dense<0.000000e+00> : vector<8x64xf32>
    %3 = tpu.matmul %1, %2, %cst {dimension_numbers = #tpu.dot_dimension_numbers<[1], [0], [0], [1], [0, 0, 1, 1], [], []>} : vector<8x16xbf16>, vector<16x64xbf16>, vector<8x64xf32> -> vector<8x64xf32>
    %c0_3 = arith.constant 0 : index
    %c0_4 = arith.constant 0 : index
    %4 = vector.load %arg3[%c0_3, %c0_4] : memref<1x64xf32, #tpu.memory_space<vmem>>, vector<1x64xf32>
    %5 = vector.broadcast %4 : vector<1x64xf32> to vector<8x64xf32>
    %6 = arith.addf %3, %5 : vector<8x64xf32>
    %cst_5 = arith.constant 0.000000e+00 : f32
    %7 = vector.broadcast %cst_5 : f32 to vector<8x64xf32>
    %8 = arith.maximumf %6, %7 : vector<8x64xf32>
    %9 = arith.truncf %8 : vector<8x64xf32> to vector<8x64xbf16>
    %c0_6 = arith.constant 0 : index
    %c0_7 = arith.constant 0 : index
    %10 = vector.load %arg4[%c0_6, %c0_7] : memref<64x32xbf16, #tpu.memory_space<vmem>>, vector<64x32xbf16>
    %cst_8 = arith.constant dense<0.000000e+00> : vector<8x32xf32>
    %11 = tpu.matmul %9, %10, %cst_8 {dimension_numbers = #tpu.dot_dimension_numbers<[1], [0], [0], [1], [0, 0, 1, 1], [], []>} : vector<8x64xbf16>, vector<64x32xbf16>, vector<8x32xf32> -> vector<8x32xf32>
    %c0_9 = arith.constant 0 : index
    %c0_10 = arith.constant 0 : index
    %12 = vector.load %arg5[%c0_9, %c0_10] : memref<1x32xf32, #tpu.memory_space<vmem>>, vector<1x32xf32>
    %13 = vector.broadcast %12 : vector<1x32xf32> to vector<8x32xf32>
    %14 = arith.addf %11, %13 : vector<8x32xf32>
    %cst_11 = arith.constant 0.000000e+00 : f32
    %15 = vector.broadcast %cst_11 : f32 to vector<8x32xf32>
    %16 = arith.maximumf %14, %15 : vector<8x32xf32>
    %c0_12 = arith.constant 0 : index
    %c0_13 = arith.constant 0 : index
    %17 = vector.load %arg6[%c0_12, %c0_13] : memref<1x32xbf16, #tpu.memory_space<vmem>>, vector<1x32xbf16>
    %18 = arith.truncf %16 : vector<8x32xf32> to vector<8x32xbf16>
    %cst_14 = arith.constant dense<0.000000e+00> : vector<1x8xf32>
    %19 = tpu.matmul %17, %18, %cst_14 {dimension_numbers = #tpu.dot_dimension_numbers<[1], [1], [0], [0], [0, 0, 1, 0], [], []>} : vector<1x32xbf16>, vector<8x32xbf16>, vector<1x8xf32> -> vector<1x8xf32>
    %c0_15 = arith.constant 0 : index
    %c0_16 = arith.constant 0 : index
    %20 = vector.load %arg7[%c0_15, %c0_16] : memref<1x1xf32, #tpu.memory_space<vmem>>, vector<1x1xf32>
    %21 = vector.broadcast %20 : vector<1x1xf32> to vector<1x8xf32>
    %22 = arith.addf %19, %21 : vector<1x8xf32>
    %23 = arith.negf %22 : vector<1x8xf32>
    %24 = math.exp %23 : vector<1x8xf32>
    %cst_17 = arith.constant 1.000000e+00 : f32
    %25 = vector.broadcast %cst_17 : f32 to vector<1x8xf32>
    %26 = arith.addf %25, %24 : vector<1x8xf32>
    %27 = arith.divf %25, %26 : vector<1x8xf32>
    %c0_18 = arith.constant 0 : index
    %c0_19 = arith.constant 0 : index
    %28 = vector.load %arg8[%c0_18, %c0_19] : memref<1x8xf32, #tpu.memory_space<vmem>>, vector<1x8xf32>
    tpu.vector_store %arg8[%c0_18, %c0_19], %27 {strides = array<i32>} : memref<1x8xf32, #tpu.memory_space<vmem>>, vector<1x8xf32>,
    return
  }
  func.func @transform_0(%arg0: i32) -> (i32, i32) {
    %c0_i32 = arith.constant 0 : i32
    %c0_i32_0 = arith.constant 0 : i32
    return %arg0, %c0_i32 : i32, i32
  }
  func.func @transform_1(%arg0: i32) -> (i32, i32) {
    %c0_i32 = arith.constant 0 : i32
    %c0_i32_0 = arith.constant 0 : i32
    %c0_i32_1 = arith.constant 0 : i32
    return %c0_i32, %c0_i32_0 : i32, i32
  }
  func.func @transform_2(%arg0: i32) -> (i32, i32) {
    %c0_i32 = arith.constant 0 : i32
    %c0_i32_0 = arith.constant 0 : i32
    %c0_i32_1 = arith.constant 0 : i32
    return %c0_i32, %c0_i32_0 : i32, i32
  }
  func.func @transform_3(%arg0: i32) -> (i32, i32) {
    %c0_i32 = arith.constant 0 : i32
    %c0_i32_0 = arith.constant 0 : i32
    %c0_i32_1 = arith.constant 0 : i32
    return %c0_i32, %c0_i32_0 : i32, i32
  }
  func.func @transform_4(%arg0: i32) -> (i32, i32) {
    %c0_i32 = arith.constant 0 : i32
    %c0_i32_0 = arith.constant 0 : i32
    %c0_i32_1 = arith.constant 0 : i32
    return %c0_i32, %c0_i32_0 : i32, i32
  }
  func.func @transform_5(%arg0: i32) -> (i32, i32) {
    %c0_i32 = arith.constant 0 : i32
    %c0_i32_0 = arith.constant 0 : i32
    %c0_i32_1 = arith.constant 0 : i32
    return %c0_i32, %c0_i32_0 : i32, i32
  }
  func.func @transform_6(%arg0: i32) -> (i32, i32) {
    %c0_i32 = arith.constant 0 : i32
    %c0_i32_0 = arith.constant 0 : i32
    %c0_i32_1 = arith.constant 0 : i32
    return %c0_i32, %c0_i32_0 : i32, i32
  }
  func.func @transform_7(%arg0: i32) -> (i32, i32) {
    %c0_i32 = arith.constant 0 : i32
    %c0_i32_0 = arith.constant 0 : i32
    return %c0_i32, %arg0 : i32, i32
  }
}

</mosaic_0001>

<bundles_post_ra>
// kernel: simple_nn_forward.1
= control target key start
LH: loop header
LB: loop body
LE: loop exit
PB: predicated region body
PF: predicated region fallthrough
CT: control target
= control target key end

     0   :  { %s322_s0 = inlined_call_operand.vmem [shape: f32[8,16], index: 0, kind: input, shape index: {}]   ;;  %s323_s1 = inlined_call_operand.vmem [shape: bf16[16,64], index: 1, kind: input, shape index: {}]   ;;  %s324_s2 = inlined_call_operand.vmem [shape: f32[1,64], index: 2, kind: input, shape index: {}]   ;;  %s325_s3 = inlined_call_operand.vmem [shape: bf16[64,32], index: 3, kind: input, shape index: {}]   ;;  %s326_s4 = inlined_call_operand.vmem [shape: f32[1,32], index: 4, kind: input, shape index: {}]   ;;  %s327_s5 = inlined_call_operand.vmem [shape: bf16[1,32], index: 5, kind: input, shape index: {}]   ;;  %s328_s6 = inlined_call_operand.<no memory space> [shape: f32[1,1], index: 6, kind: input, shape index: {}]   ;;  %s329_s7 = inlined_call_operand.hbm [shape: f32[1,8], index: 7, kind: output, shape index: {}]  }
   0x1   :  { %v12_v0 = vstv %s328_s6 }
   0x2   :  { %13 = vst [vmem:[#allocation2] sm:$0x1] %v12_v0 }
   0x3   :  { %v207_v1 = vld [vmem:[%s323_s1] sm:$0xff]  ;;  %v211_v3 = vld [vmem:[%s325_s3 + $0x18] sm:$0xff]  ;;  %vm44_vm0 = vcmask 130048   ;;  %v210_v5 = vld [vmem:[%s325_s3 + $0x10] sm:$0xff] }
   0x4   :  { %v30_v2 = vld [vmem:[%s322_s0] sm:$0xff]  ;;  %55 = vmatpush.bf16.msra.mxu0 %v207_v1  ;;  %107 = vmatpush.bf16.msra.mxu1 %v211_v3 }
   0x5   :  { %v31_v4 = vpack.c.bf16 %v30_v2, %v30_v2 }
   0x6   :  { %14 = vsyncpa [#allocation4], 0  ;;  %v209_v6 = vld [vmem:[%s325_s3 + $0x8] sm:$0xff]  ;;  %v208_v7 = vld [vmem:[%s325_s3] sm:$0xff]  ;;  %vm99_vm1 = vcmask 523264   ;;  %v247_v15 = vmov 0  }
   0x7   :  { %187 = vmatmul.msk.bf16.vlgmr.msra.gmra.mxu0 %vm44_vm0, %v31_v4  ;;  %v215_v8 = vld [vmem:[%s324_s2] ss:$0 sm:$0xff]  ;;  %214 = vset.pattern.permute.xlu0 %v247_v15  ;;  %vm126_vm2 = vcmask 261120   ;;  %s174_s18 = sshll.u32 %s329_s7, 4  ;;  %vm165_vm6 = vcmask 57344   ;;  %s175_s18 = int_to_ptr.hbm [resolvable:$true] %s174_s18 }
   0x8   :  { %108 = vmatpush.bf16.msra.mxu1 %v210_v5  ;;  %v216_v16 = vld [vmem:[%s326_s4] ss:$0 sm:$0xff]  ;;  %s248_s4 = smov [#allocation3]  }
   0x9   :  { %v119_v14 = vld [vmem:[#allocation2] sm:$0x1] }
   0xa   :  { %122 = vperm.xlu0 %214, %v119_v14   ;;  %v117_v23 = vld [vmem:[%s327_s5] sm:$0x1]  ;;  %s172_s5 = sshll.u32 %s248_s4, 4  ;;  %s173_s5 = int_to_ptr.vmem [resolvable:$true] %s172_s5 }
   0xc   :  { %109 = vmatpush.bf16.msra.mxu1 %v209_v6 }
  0x10   :  { %110 = vmatpush.bf16.msra.mxu1 %v208_v7 }
  0x7c   :  { %v123_v24 = vpop.permute.xlu0 %122 }
  0x7d   :  { %v125_v25 = vperm.slane %v123_v24, 0 }
  0x84   :  { %v57_v9 = vpop.f32.mrf.mxu0 }
  0x85   :  { %v58_v10 = vadd.f32 %v215_v8, %v57_v9 }
  0x87   :  { %v61_v11 = vmax.f32 %v58_v10, 0.0 }
  0x89   :  { %v62_v12 = vpack.c.bf16 %v61_v11, %v61_v11 }
  0x8b   :  { %204 = vmatmul.msk.bf16.vlgmr.msra.gmra.mxu1 %vm99_vm1, %v62_v12 }
  0x8c   :  { %v59_v13 = vpop.f32.mrf.mxu0 }
 0x108   :  { %v112_v17 = vpop.f32.mrf.mxu1 }
 0x109   :  { %v113_v18 = vadd.f32 %v216_v16, %v112_v17 }
 0x10b   :  { %v116_v19 = vmax.f32 %v113_v18, 0.0 }
 0x10d   :  { %v118_v20 = vpack.c.bf16 %v116_v19, %v116_v19 }
 0x10f   :  { %v131_v21 = vsel %vm126_vm2, %v118_v20, 0 }
 0x110   :  { %v114_v22 = vpop.f32.mrf.mxu1  ;;  %140 = vmatpush.bf16.xpose.msra.mxu2 %v131_v21 }
 0x117   :  { %205 = vmatmul.msk.bf16.vlgmr.msra.gmra.mxu2 %vm126_vm2, %v117_v23 }
 0x19a   :  { %v142_v26 = vpop.f32.mrf.mxu2 }
 0x19b   :  { %v143_v27 = vadd.f32 %v142_v26, %v125_v25 }
 0x19d   :  { %v206_v28 = vmul.f32 -1.442695, %v143_v27 }
 0x19f   :  { %217 = vpow2.f32 %v206_v28 }
 0x1a2   :  { %v144_v29 = vpop.f32.mrf.mxu2 }
 0x1a5   :  { %v218_v30 = vpop.eup %217 }
 0x1a6   :  { %v149_v31 = vadd.f32 1.0, %v218_v30 }
 0x1a8   :  { %219 = vrcp.f32 %v149_v31  ;;  %v161_v35 = vand.u32 2147483648, %v149_v31  ;;  %v159_v37 = vand.u32 2147483647, %v149_v31  ;;  %vm155_vm4 = vweird.f32 %v149_v31 }
 0x1aa   :  { %v162_v39 = vor.u32 1.1754944e-38, %v161_v35  ;;  %vm160_vm7 = vcmp.eq.f32.partialorder %v159_v37, 8.507059e+37 }
 0x1ae   :  { %v220_v32 = vpop.eup %219 }
 0x1af   :  { %v151_v33 = vmul.f32 %v220_v32, %v149_v31  ;;  %vm156_vm3 = vweird.f32 %v220_v32 }
 0x1b0   :  { %vm157_vm5 = vmor %vm155_vm4, %vm156_vm3 }
 0x1b1   :  { %v152_v34 = vsub.f32 1.0, %v151_v33 }
 0x1b3   :  { %v153_v36 = vmul.f32 %v220_v32, %v152_v34 }
 0x1b5   :  { %v154_v38 = vadd.f32 %v220_v32, %v153_v36 }
 0x1b7   :  { %v158_v40 = vsel %vm157_vm5, %v220_v32, %v154_v38 }
 0x1b8   :  { %v163_v41 = vsel %vm160_vm7, %v162_v39, %v158_v40 }
 0x1b9   :  { %166 = vst.msk [vmem:[#allocation3] sm:$0x1] %vm165_vm6, %v163_v41 }
 0x1ba   :  { %177 = dma.vmem_to_hbm [thread:$0]  %s173_s5, 16, %s175_s18, [#allocation4]  }
 0x1bb   :  { %245 = dma.done.wait [#allocation4], 16  }
 0x1bc   :  { %246 = vsyncadd [#allocation4], 4294967280 }
 0x1bd   :  { %182 = vsyncpa [#allocation4], 1 }

</bundles_post_ra>
